<compile_context>
chip_gen: v7x
topology: tpu7x:2x2x1
jax: 0.10.0
libtpu: 0.0.40
codegen_flags: <defaults>
</compile_context>

<pallas_src>
import functools

import jax
import jax.numpy as jnp
from jax import lax
from jax.experimental import pallas as pl
from jax.experimental.pallas import tpu as pltpu

EPS = 1e-4  # torch BatchNorm eps=0.0001


def _fused_kernel(patch_ref, p1_ref, p2_ref, out_ref,
                  v1_scr, v5_scr, s1, ss1, s2, ss2, *, inv_m):
    p = pl.program_id(0)      # phase: 0=conv1+stats1, 1=bn1/gate/conv2+stats2, 2=bn2/gate/out
    n = pl.program_id(1)      # batch index
    st = pl.program_id(2)     # spatial tile index
    n_st = pl.num_programs(2)
    t = n * n_st + st         # flat tile id used to index the VMEM scratch

    @pl.when(jnp.logical_and(p == 0, jnp.logical_and(n == 0, st == 0)))
    def _init():
        s1[...] = jnp.zeros_like(s1)
        ss1[...] = jnp.zeros_like(ss1)
        s2[...] = jnp.zeros_like(s2)
        ss2[...] = jnp.zeros_like(ss2)

    @pl.when(p == 0)
    def _phase0():
        pt = patch_ref[0]                                  # (12, TS), lane-dense
        w1 = p1_ref[:, 0:12]                               # (6, 12)
        b1 = p1_ref[:, 12:13]                              # (6, 1)
        v1 = jnp.dot(w1, pt, preferred_element_type=jnp.float32) + b1   # (6, TS)
        v1_scr[t] = v1
        s1[...] += jnp.sum(v1, axis=1, keepdims=True)
        ss1[...] += jnp.sum(v1 * v1, axis=1, keepdims=True)

    @pl.when(p == 1)
    def _phase1():
        g1 = p1_ref[:, 13:14]
        be1 = p1_ref[:, 14:15]
        mean1 = s1[...] * inv_m
        var1 = ss1[...] * inv_m - mean1 * mean1            # biased (training) variance
        scale1 = g1 * lax.rsqrt(var1 + EPS)
        shift1 = be1 - mean1 * scale1
        v1 = v1_scr[t]                                     # (6, TS)
        v4 = v1 * lax.logistic(v1 * scale1 + shift1)       # v1 * sigmoid(bn1(v1))
        w2 = p2_ref[:, 0:6]                                # (16, 6)
        b2 = p2_ref[:, 6:7]                                # (16, 1)
        v5 = jnp.dot(w2, v4, preferred_element_type=jnp.float32) + b2   # (16, TS)
        v5_scr[t] = v5
        s2[...] += jnp.sum(v5, axis=1, keepdims=True)
        ss2[...] += jnp.sum(v5 * v5, axis=1, keepdims=True)

    @pl.when(p == 2)
    def _phase2():
        g2 = p2_ref[:, 7:8]
        be2 = p2_ref[:, 8:9]
        mean2 = s2[...] * inv_m
        var2 = ss2[...] * inv_m - mean2 * mean2
        scale2 = g2 * lax.rsqrt(var2 + EPS)
        shift2 = be2 - mean2 * scale2
        v5 = v5_scr[t]                                     # (16, TS)
        out_ref[0] = v5 * lax.logistic(v5 * scale2 + shift2)


def _pick_spatial_tile(s):
    for ts in (2048, 1024, 512, 256, 128):
        if s % ts == 0:
            return ts
    return s


def _vmem_limit_bytes():
    phys = None
    try:
        info = pltpu.get_tpu_info()
        phys = getattr(info, "vmem_capacity_bytes", None)
    except Exception:
        phys = None
    if not phys:
        phys = 64 << 20            # assume the smallest generation (v7x: 64 MiB / TC)
    return int(min(phys * 3 // 4, 96 << 20))


def model_forward(x_nchw, params):
    """x_nchw: (N, 3, H, W) float32 with H, W even. Returns (N, 16, H//2, W//2)."""
    p1, p2 = params
    N, C, H, W = x_nchw.shape
    assert H % 2 == 0 and W % 2 == 0
    Ho, Wo = H // 2, W // 2
    S = Ho * Wo
    M = N * S
    TS = _pick_spatial_tile(S)
    n_st = S // TS
    NT = N * n_st

    # channels-first im2col of the 2x2/stride-2 patches: (N, C*kh*kw, Ho*Wo).
    # TODO(synk): fuse this transpose into the kernel (strided in-kernel loads or
    # manual DMA from a pl.ANY ref) to remove the remaining extra HBM pass.
    patches = (x_nchw.reshape(N, C, Ho, 2, Wo, 2)
               .transpose(0, 1, 3, 5, 2, 4)
               .reshape(N, 4 * C, S))

    kernel = functools.partial(_fused_kernel, inv_m=1.0 / float(M))

    cost = pl.CostEstimate(
        flops=2 * M * (12 * 6 + 6 * 16) + 12 * M * (6 + 16),
        transcendentals=M * (6 + 16),
        bytes_accessed=4 * M * (12 + 16),
    )

    out = pl.pallas_call(
        kernel,
        out_shape=jax.ShapeDtypeStruct((N, 16, S), jnp.float32),
        grid_spec=pltpu.PrefetchScalarGridSpec(
            num_scalar_prefetch=0,
            grid=(3, N, n_st),
            in_specs=[
                # patches only needed in phase 0; clamp the index afterwards so the
                # pipeline stops re-fetching (unchanged block index => no new DMA).
                pl.BlockSpec((1, 4 * C, TS),
                             lambda p, n, st: (jnp.where(p == 0, n, 0), 0,
                                               jnp.where(p == 0, st, 0))),
                pl.BlockSpec((6, 15), lambda p, n, st: (0, 0)),    # packed conv1/bn1 params
                pl.BlockSpec((16, 9), lambda p, n, st: (0, 0)),    # packed conv2/bn2 params
            ],
            # output written only in phase 2; keep the index parked at (0,0,0) before
            # that so no garbage block is ever flushed to HBM.
            out_specs=pl.BlockSpec((1, 16, TS),
                                   lambda p, n, st: (jnp.where(p == 2, n, 0), 0,
                                                     jnp.where(p == 2, st, 0))),
            scratch_shapes=[
                pltpu.VMEM((NT, 6, TS), jnp.float32),    # v1 tiles (conv1 output)
                pltpu.VMEM((NT, 16, TS), jnp.float32),   # v5 tiles (conv2 output)
                pltpu.VMEM((6, 1), jnp.float32),         # sum(v1)    per channel
                pltpu.VMEM((6, 1), jnp.float32),         # sum(v1^2)  per channel
                pltpu.VMEM((16, 1), jnp.float32),        # sum(v5)    per channel
                pltpu.VMEM((16, 1), jnp.float32),        # sum(v5^2)  per channel
            ],
        ),
        compiler_params=pltpu.CompilerParams(
            # Phase axis is inherently serial; tile axes accumulate into shared BN
            # stats scratch, so they are "arbitrary" too.
            # TODO(synk): per-core partial BN stats would let the tile axes be
            # "parallel" to use both v7x TensorCores.
            dimension_semantics=("arbitrary", "arbitrary", "arbitrary"),
            vmem_limit_bytes=_vmem_limit_bytes(),
        ),
        cost_estimate=cost,
    )(patches, p1, p2)

    # already channels-first: NCHW is a free reshape (no transpose pass over HBM).
    return out.reshape(N, 16, Ho, Wo)


def init_params(key):
    """Deterministic synthetic parameters (shapes/semantics from the torch module)."""
    k1, k2, k3, k4 = jax.random.split(key, 4)
    # conv1: torch weight (6, 3, 2, 2) -> (Cout, Cin*kh*kw) = (6, 12)
    w1 = jax.random.normal(k1, (6, 12), jnp.float32) * 0.2
    b1 = jax.random.normal(k2, (6, 1), jnp.float32) * 0.1
    # conv2: torch weight (16, 6, 1, 1) -> (16, 6)
    w2 = jax.random.normal(k3, (16, 6), jnp.float32) * 0.2
    b2 = jax.random.normal(k4, (16, 1), jnp.float32) * 0.1
    # BatchNorm affine params at torch init: gamma=1, beta=0
    g1, be1 = jnp.ones((6, 1), jnp.float32), jnp.zeros((6, 1), jnp.float32)
    g2, be2 = jnp.ones((16, 1), jnp.float32), jnp.zeros((16, 1), jnp.float32)
    p1 = jnp.concatenate([w1, b1, g1, be1], axis=1)   # (6, 15)
    p2 = jnp.concatenate([w2, b2, g2, be2], axis=1)   # (16, 9)
    return (p1, p2)


def reference_forward(x_nchw, params):
    """Pure-JAX reference with the same math as the torch module (training-mode BN)."""
    # TODO(synk): running_mean/running_var momentum updates (torch training side
    # effect) are not produced; only forward activations are matched.
    p1, p2 = params
    w1, b1, g1, be1 = p1[:, 0:12], p1[:, 12:13], p1[:, 13:14], p1[:, 14:15]
    w2, b2, g2, be2 = p2[:, 0:6], p2[:, 6:7], p2[:, 7:8], p2[:, 8:9]
    N, C, H, W = x_nchw.shape
    Ho, Wo = H // 2, W // 2
    patches = (x_nchw.reshape(N, C, Ho, 2, Wo, 2)
               .transpose(0, 1, 3, 5, 2, 4)
               .reshape(N, 4 * C, Ho * Wo))
    hi = lax.Precision.HIGHEST
    v1 = jnp.einsum('ok,nks->nos', w1, patches, precision=hi) + b1[None]
    m1 = jnp.mean(v1, axis=(0, 2), keepdims=True)
    var1 = jnp.mean((v1 - m1) ** 2, axis=(0, 2), keepdims=True)
    v2 = (v1 - m1) * lax.rsqrt(var1 + EPS) * g1[None] + be1[None]
    v4 = v1 * jax.nn.sigmoid(v2)
    v5 = jnp.einsum('ok,nks->nos', w2, v4, precision=hi) + b2[None]
    m2 = jnp.mean(v5, axis=(0, 2), keepdims=True)
    var2 = jnp.mean((v5 - m2) ** 2, axis=(0, 2), keepdims=True)
    v6 = (v5 - m2) * lax.rsqrt(var2 + EPS) * g2[None] + be2[None]
    return (v5 * jax.nn.sigmoid(v6)).reshape(N, 16, Ho, Wo)


if __name__ == "__main__":
    key = jax.random.PRNGKey(0)
    kx, kp = jax.random.split(key)
    # batch=2, in_channels=3, 32x32 spatial -> output (2, 16, 16, 16); the 256-wide
    # spatial tile keeps kernel loads/stores lane-dense (multiple of 128).
    x = jax.random.normal(kx, (2, 3, 32, 32), jnp.float32)
    params = init_params(kp)

    y = jax.jit(model_forward)(x, params)
    jax.block_until_ready(y)
    assert y.shape == (2, 16, 16, 16), y.shape

    y_ref = reference_forward(x, params)
    err = float(jnp.max(jnp.abs(y - y_ref)))
    assert jnp.allclose(y, y_ref, atol=2e-3, rtol=2e-3), err

    print("KERNEL_OK")
</pallas_src>

<mosaic_0001>
module attributes {stable_mosaic.version = 11 : i64} {
  func.func @_fused_kernel(%arg0: i32, %arg1: i32, %arg2: i32, %arg3: memref<1x12x256xf32, #tpu.memory_space<vmem>>, %arg4: memref<6x15xf32, #tpu.memory_space<vmem>>, %arg5: memref<16x9xf32, #tpu.memory_space<vmem>>, %arg6: memref<1x16x256xf32, #tpu.memory_space<vmem>>, %arg7: memref<2x6x256xf32, #tpu.memory_space<vmem>>, %arg8: memref<2x16x256xf32, #tpu.memory_space<vmem>>, %arg9: memref<6x1xf32, #tpu.memory_space<vmem>>, %arg10: memref<6x1xf32, #tpu.memory_space<vmem>>, %arg11: memref<16x1xf32, #tpu.memory_space<vmem>>, %arg12: memref<16x1xf32, #tpu.memory_space<vmem>>) attributes {dimension_semantics = [#tpu.dimension_semantics<arbitrary>, #tpu.dimension_semantics<arbitrary>, #tpu.dimension_semantics<arbitrary>], iteration_bounds = array<i64: 3, 2, 1>, scalar_prefetch = 0 : i64, scratch_operands = 6 : i64, tpu.core_type = #tpu.core_type<tc>, window_params = [{transform_indices = @transform_0, window_bounds = array<i64: 1, 12, 256>}, {pipeline_mode = #tpu.pipeline_mode<synchronous>, transform_indices = @transform_1, window_bounds = array<i64: 6, 15>}, {pipeline_mode = #tpu.pipeline_mode<synchronous>, transform_indices = @transform_2, window_bounds = array<i64: 16, 9>}, {transform_indices = @transform_3, window_bounds = array<i64: 1, 16, 256>}]} {
    %c1_i32 = arith.constant 1 : i32
    %0 = arith.muli %arg1, %c1_i32 : i32
    %1 = arith.addi %0, %arg2 : i32
    %c0_i32 = arith.constant 0 : i32
    %2 = arith.cmpi eq, %arg0, %c0_i32 : i32
    %c0_i32_0 = arith.constant 0 : i32
    %3 = arith.cmpi eq, %arg1, %c0_i32_0 : i32
    %c0_i32_1 = arith.constant 0 : i32
    %4 = arith.cmpi eq, %arg2, %c0_i32_1 : i32
    %5 = arith.andi %3, %4 : i1
    %6 = arith.andi %2, %5 : i1
    %7 = arith.extui %6 : i1 to i32
    %c0_i32_2 = arith.constant 0 : i32
    %8 = arith.cmpi ne, %7, %c0_i32_2 : i32
    scf.if %8 {
      %cst = arith.constant 0.000000e+00 : f32
      %18 = vector.broadcast %cst : f32 to vector<6x1xf32>
      %c0 = arith.constant 0 : index
      %c0_8 = arith.constant 0 : index
      %19 = vector.load %arg9[%c0, %c0_8] : memref<6x1xf32, #tpu.memory_space<vmem>>, vector<6x1xf32>
      tpu.vector_store %arg9[%c0, %c0_8], %18 {strides = array<i32>} : memref<6x1xf32, #tpu.memory_space<vmem>>, vector<6x1xf32>,
      %cst_9 = arith.constant 0.000000e+00 : f32
      %20 = vector.broadcast %cst_9 : f32 to vector<6x1xf32>
      %c0_10 = arith.constant 0 : index
      %c0_11 = arith.constant 0 : index
      %21 = vector.load %arg10[%c0_10, %c0_11] : memref<6x1xf32, #tpu.memory_space<vmem>>, vector<6x1xf32>
      tpu.vector_store %arg10[%c0_10, %c0_11], %20 {strides = array<i32>} : memref<6x1xf32, #tpu.memory_space<vmem>>, vector<6x1xf32>,
      %cst_12 = arith.constant 0.000000e+00 : f32
      %22 = vector.broadcast %cst_12 : f32 to vector<16x1xf32>
      %c0_13 = arith.constant 0 : index
      %c0_14 = arith.constant 0 : index
      %23 = vector.load %arg11[%c0_13, %c0_14] : memref<16x1xf32, #tpu.memory_space<vmem>>, vector<16x1xf32>
      tpu.vector_store %arg11[%c0_13, %c0_14], %22 {strides = array<i32>} : memref<16x1xf32, #tpu.memory_space<vmem>>, vector<16x1xf32>,
      %cst_15 = arith.constant 0.000000e+00 : f32
      %24 = vector.broadcast %cst_15 : f32 to vector<16x1xf32>
      %c0_16 = arith.constant 0 : index
      %c0_17 = arith.constant 0 : index
      %25 = vector.load %arg12[%c0_16, %c0_17] : memref<16x1xf32, #tpu.memory_space<vmem>>, vector<16x1xf32>
      tpu.vector_store %arg12[%c0_16, %c0_17], %24 {strides = array<i32>} : memref<16x1xf32, #tpu.memory_space<vmem>>, vector<16x1xf32>,
    } else {
    }
    %c0_i32_3 = arith.constant 0 : i32
    %9 = arith.cmpi eq, %arg0, %c0_i32_3 : i32
    %10 = arith.extui %9 : i1 to i32
    %c0_i32_4 = arith.constant 0 : i32
    %11 = arith.cmpi ne, %10, %c0_i32_4 : i32
    scf.if %11 {
      %c0 = arith.constant 0 : index
      %c0_8 = arith.constant 0 : index
      %c0_9 = arith.constant 0 : index
      %18 = vector.load %arg3[%c0, %c0_8, %c0_9] : memref<1x12x256xf32, #tpu.memory_space<vmem>>, vector<1x12x256xf32>
      %19 = vector.shape_cast %18 : vector<1x12x256xf32> to vector<12x256xf32>
      %c0_10 = arith.constant 0 : index
      %c0_11 = arith.constant 0 : index
      %20 = vector.load %arg4[%c0_10, %c0_11] : memref<6x15xf32, #tpu.memory_space<vmem>>, vector<6x12xf32>
      %c0_12 = arith.constant 0 : index
      %c12 = arith.constant 12 : index
      %21 = vector.load %arg4[%c0_12, %c12] : memref<6x15xf32, #tpu.memory_space<vmem>>, vector<6x1xf32>
      %cst = arith.constant dense<0.000000e+00> : vector<6x256xf32>
      %22 = tpu.matmul %20, %19, %cst {dimension_numbers = #tpu.dot_dimension_numbers<[1], [0], [0], [1], [0, 0, 1, 1], [], []>} : vector<6x12xf32>, vector<12x256xf32>, vector<6x256xf32> -> vector<6x256xf32>
      %23 = vector.broadcast %21 : vector<6x1xf32> to vector<6x256xf32>
      %24 = arith.addf %22, %23 : vector<6x256xf32>
      %25 = arith.index_cast %1 : i32 to index
      %c0_13 = arith.constant 0 : index
      %c0_14 = arith.constant 0 : index
      %26 = vector.load %arg7[%25, %c0_13, %c0_14] : memref<2x6x256xf32, #tpu.memory_space<vmem>>, vector<1x6x256xf32>
      %27 = vector.shape_cast %26 : vector<1x6x256xf32> to vector<6x256xf32>
      %28 = vector.shape_cast %24 : vector<6x256xf32> to vector<1x6x256xf32>
      tpu.vector_store %arg7[%25, %c0_13, %c0_14], %28 {strides = array<i32>} : memref<2x6x256xf32, #tpu.memory_space<vmem>>, vector<1x6x256xf32>,
      %c0_15 = arith.constant 0 : index
      %c0_16 = arith.constant 0 : index
      %29 = vector.load %arg9[%c0_15, %c0_16] : memref<6x1xf32, #tpu.memory_space<vmem>>, vector<6x1xf32>
      %cst_17 = arith.constant dense<0.000000e+00> : vector<6xf32>
      %30 = vector.multi_reduction <add>, %24, %cst_17 [1] : vector<6x256xf32> to vector<6xf32>
      %31 = vector.shape_cast %30 : vector<6xf32> to vector<6x1xf32>
      %32 = arith.addf %29, %31 : vector<6x1xf32>
      %c0_18 = arith.constant 0 : index
      %c0_19 = arith.constant 0 : index
      %33 = vector.load %arg9[%c0_18, %c0_19] : memref<6x1xf32, #tpu.memory_space<vmem>>, vector<6x1xf32>
      tpu.vector_store %arg9[%c0_18, %c0_19], %32 {strides = array<i32>} : memref<6x1xf32, #tpu.memory_space<vmem>>, vector<6x1xf32>,
      %c0_20 = arith.constant 0 : index
      %c0_21 = arith.constant 0 : index
      %34 = vector.load %arg10[%c0_20, %c0_21] : memref<6x1xf32, #tpu.memory_space<vmem>>, vector<6x1xf32>
      %35 = arith.mulf %24, %24 : vector<6x256xf32>
      %cst_22 = arith.constant dense<0.000000e+00> : vector<6xf32>
      %36 = vector.multi_reduction <add>, %35, %cst_22 [1] : vector<6x256xf32> to vector<6xf32>
      %37 = vector.shape_cast %36 : vector<6xf32> to vector<6x1xf32>
      %38 = arith.addf %34, %37 : vector<6x1xf32>
      %c0_23 = arith.constant 0 : index
      %c0_24 = arith.constant 0 : index
      %39 = vector.load %arg10[%c0_23, %c0_24] : memref<6x1xf32, #tpu.memory_space<vmem>>, vector<6x1xf32>
      tpu.vector_store %arg10[%c0_23, %c0_24], %38 {strides = array<i32>} : memref<6x1xf32, #tpu.memory_space<vmem>>, vector<6x1xf32>,
    } else {
    }
    %c1_i32_5 = arith.constant 1 : i32
    %12 = arith.cmpi eq, %arg0, %c1_i32_5 : i32
    %13 = arith.extui %12 : i1 to i32
    %c0_i32_6 = arith.constant 0 : i32
    %14 = arith.cmpi ne, %13, %c0_i32_6 : i32
    scf.if %14 {
      %c0 = arith.constant 0 : index
      %c13 = arith.constant 13 : index
      %18 = vector.load %arg4[%c0, %c13] : memref<6x15xf32, #tpu.memory_space<vmem>>, vector<6x1xf32>
      %c0_8 = arith.constant 0 : index
      %c14 = arith.constant 14 : index
      %19 = vector.load %arg4[%c0_8, %c14] : memref<6x15xf32, #tpu.memory_space<vmem>>, vector<6x1xf32>
      %c0_9 = arith.constant 0 : index
      %c0_10 = arith.constant 0 : index
      %20 = vector.load %arg9[%c0_9, %c0_10] : memref<6x1xf32, #tpu.memory_space<vmem>>, vector<6x1xf32>
      %cst = arith.constant 0.001953125 : f32
      %21 = vector.broadcast %cst : f32 to vector<6x1xf32>
      %22 = arith.mulf %20, %21 : vector<6x1xf32>
      %c0_11 = arith.constant 0 : index
      %c0_12 = arith.constant 0 : index
      %23 = vector.load %arg10[%c0_11, %c0_12] : memref<6x1xf32, #tpu.memory_space<vmem>>, vector<6x1xf32>
      %cst_13 = arith.constant 0.001953125 : f32
      %24 = vector.broadcast %cst_13 : f32 to vector<6x1xf32>
      %25 = arith.mulf %23, %24 : vector<6x1xf32>
      %26 = arith.mulf %22, %22 : vector<6x1xf32>
      %27 = arith.subf %25, %26 : vector<6x1xf32>
      %cst_14 = arith.constant 9.99999974E-5 : f32
      %28 = vector.broadcast %cst_14 : f32 to vector<6x1xf32>
      %29 = arith.addf %27, %28 : vector<6x1xf32>
      %30 = math.rsqrt %29 : vector<6x1xf32>
      %31 = arith.mulf %18, %30 : vector<6x1xf32>
      %32 = arith.mulf %22, %31 : vector<6x1xf32>
      %33 = arith.subf %19, %32 : vector<6x1xf32>
      %34 = arith.index_cast %1 : i32 to index
      %c0_15 = arith.constant 0 : index
      %c0_16 = arith.constant 0 : index
      %35 = vector.load %arg7[%34, %c0_15, %c0_16] : memref<2x6x256xf32, #tpu.memory_space<vmem>>, vector<1x6x256xf32>
      %36 = vector.shape_cast %35 : vector<1x6x256xf32> to vector<6x256xf32>
      %37 = vector.broadcast %31 : vector<6x1xf32> to vector<6x256xf32>
      %38 = arith.mulf %36, %37 : vector<6x256xf32>
      %39 = vector.broadcast %33 : vector<6x1xf32> to vector<6x256xf32>
      %40 = arith.addf %38, %39 : vector<6x256xf32>
      %41 = arith.negf %40 : vector<6x256xf32>
      %42 = math.exp %41 : vector<6x256xf32>
      %cst_17 = arith.constant 1.000000e+00 : f32
      %43 = vector.broadcast %cst_17 : f32 to vector<6x256xf32>
      %44 = arith.addf %43, %42 : vector<6x256xf32>
      %45 = arith.divf %43, %44 : vector<6x256xf32>
      %46 = arith.mulf %36, %45 : vector<6x256xf32>
      %c0_18 = arith.constant 0 : index
      %c0_19 = arith.constant 0 : index
      %47 = vector.load %arg5[%c0_18, %c0_19] : memref<16x9xf32, #tpu.memory_space<vmem>>, vector<16x6xf32>
      %c0_20 = arith.constant 0 : index
      %c6 = arith.constant 6 : index
      %48 = vector.load %arg5[%c0_20, %c6] : memref<16x9xf32, #tpu.memory_space<vmem>>, vector<16x1xf32>
      %cst_21 = arith.constant dense<0.000000e+00> : vector<16x256xf32>
      %49 = tpu.matmul %47, %46, %cst_21 {dimension_numbers = #tpu.dot_dimension_numbers<[1], [0], [0], [1], [0, 0, 1, 1], [], []>} : vector<16x6xf32>, vector<6x256xf32>, vector<16x256xf32> -> vector<16x256xf32>
      %50 = vector.broadcast %48 : vector<16x1xf32> to vector<16x256xf32>
      %51 = arith.addf %49, %50 : vector<16x256xf32>
      %52 = arith.index_cast %1 : i32 to index
      %c0_22 = arith.constant 0 : index
      %c0_23 = arith.constant 0 : index
      %53 = vector.load %arg8[%52, %c0_22, %c0_23] : memref<2x16x256xf32, #tpu.memory_space<vmem>>, vector<1x16x256xf32>
      %54 = vector.shape_cast %53 : vector<1x16x256xf32> to vector<16x256xf32>
      %55 = vector.shape_cast %51 : vector<16x256xf32> to vector<1x16x256xf32>
      tpu.vector_store %arg8[%52, %c0_22, %c0_23], %55 {strides = array<i32>} : memref<2x16x256xf32, #tpu.memory_space<vmem>>, vector<1x16x256xf32>,
      %c0_24 = arith.constant 0 : index
      %c0_25 = arith.constant 0 : index
      %56 = vector.load %arg11[%c0_24, %c0_25] : memref<16x1xf32, #tpu.memory_space<vmem>>, vector<16x1xf32>
      %cst_26 = arith.constant dense<0.000000e+00> : vector<16xf32>
      %57 = vector.multi_reduction <add>, %51, %cst_26 [1] : vector<16x256xf32> to vector<16xf32>
      %58 = vector.shape_cast %57 : vector<16xf32> to vector<16x1xf32>
      %59 = arith.addf %56, %58 : vector<16x1xf32>
      %c0_27 = arith.constant 0 : index
      %c0_28 = arith.constant 0 : index
      %60 = vector.load %arg11[%c0_27, %c0_28] : memref<16x1xf32, #tpu.memory_space<vmem>>, vector<16x1xf32>
      tpu.vector_store %arg11[%c0_27, %c0_28], %59 {strides = array<i32>} : memref<16x1xf32, #tpu.memory_space<vmem>>, vector<16x1xf32>,
      %c0_29 = arith.constant 0 : index
      %c0_30 = arith.constant 0 : index
      %61 = vector.load %arg12[%c0_29, %c0_30] : memref<16x1xf32, #tpu.memory_space<vmem>>, vector<16x1xf32>
      %62 = arith.mulf %51, %51 : vector<16x256xf32>
      %cst_31 = arith.constant dense<0.000000e+00> : vector<16xf32>
      %63 = vector.multi_reduction <add>, %62, %cst_31 [1] : vector<16x256xf32> to vector<16xf32>
      %64 = vector.shape_cast %63 : vector<16xf32> to vector<16x1xf32>
      %65 = arith.addf %61, %64 : vector<16x1xf32>
      %c0_32 = arith.constant 0 : index
      %c0_33 = arith.constant 0 : index
      %66 = vector.load %arg12[%c0_32, %c0_33] : memref<16x1xf32, #tpu.memory_space<vmem>>, vector<16x1xf32>
      tpu.vector_store %arg12[%c0_32, %c0_33], %65 {strides = array<i32>} : memref<16x1xf32, #tpu.memory_space<vmem>>, vector<16x1xf32>,
    } else {
    }
    %c2_i32 = arith.constant 2 : i32
    %15 = arith.cmpi eq, %arg0, %c2_i32 : i32
    %16 = arith.extui %15 : i1 to i32
    %c0_i32_7 = arith.constant 0 : i32
    %17 = arith.cmpi ne, %16, %c0_i32_7 : i32
    scf.if %17 {
      %c0 = arith.constant 0 : index
      %c7 = arith.constant 7 : index
      %18 = vector.load %arg5[%c0, %c7] : memref<16x9xf32, #tpu.memory_space<vmem>>, vector<16x1xf32>
      %c0_8 = arith.constant 0 : index
      %c8 = arith.constant 8 : index
      %19 = vector.load %arg5[%c0_8, %c8] : memref<16x9xf32, #tpu.memory_space<vmem>>, vector<16x1xf32>
      %c0_9 = arith.constant 0 : index
      %c0_10 = arith.constant 0 : index
      %20 = vector.load %arg11[%c0_9, %c0_10] : memref<16x1xf32, #tpu.memory_space<vmem>>, vector<16x1xf32>
      %cst = arith.constant 0.001953125 : f32
      %21 = vector.broadcast %cst : f32 to vector<16x1xf32>
      %22 = arith.mulf %20, %21 : vector<16x1xf32>
      %c0_11 = arith.constant 0 : index
      %c0_12 = arith.constant 0 : index
      %23 = vector.load %arg12[%c0_11, %c0_12] : memref<16x1xf32, #tpu.memory_space<vmem>>, vector<16x1xf32>
      %cst_13 = arith.constant 0.001953125 : f32
      %24 = vector.broadcast %cst_13 : f32 to vector<16x1xf32>
      %25 = arith.mulf %23, %24 : vector<16x1xf32>
      %26 = arith.mulf %22, %22 : vector<16x1xf32>
      %27 = arith.subf %25, %26 : vector<16x1xf32>
      %cst_14 = arith.constant 9.99999974E-5 : f32
      %28 = vector.broadcast %cst_14 : f32 to vector<16x1xf32>
      %29 = arith.addf %27, %28 : vector<16x1xf32>
      %30 = math.rsqrt %29 : vector<16x1xf32>
      %31 = arith.mulf %18, %30 : vector<16x1xf32>
      %32 = arith.mulf %22, %31 : vector<16x1xf32>
      %33 = arith.subf %19, %32 : vector<16x1xf32>
      %34 = arith.index_cast %1 : i32 to index
      %c0_15 = arith.constant 0 : index
      %c0_16 = arith.constant 0 : index
      %35 = vector.load %arg8[%34, %c0_15, %c0_16] : memref<2x16x256xf32, #tpu.memory_space<vmem>>, vector<1x16x256xf32>
      %36 = vector.shape_cast %35 : vector<1x16x256xf32> to vector<16x256xf32>
      %37 = vector.broadcast %31 : vector<16x1xf32> to vector<16x256xf32>
      %38 = arith.mulf %36, %37 : vector<16x256xf32>
      %39 = vector.broadcast %33 : vector<16x1xf32> to vector<16x256xf32>
      %40 = arith.addf %38, %39 : vector<16x256xf32>
      %41 = arith.negf %40 : vector<16x256xf32>
      %42 = math.exp %41 : vector<16x256xf32>
      %cst_17 = arith.constant 1.000000e+00 : f32
      %43 = vector.broadcast %cst_17 : f32 to vector<16x256xf32>
      %44 = arith.addf %43, %42 : vector<16x256xf32>
      %45 = arith.divf %43, %44 : vector<16x256xf32>
      %46 = arith.mulf %36, %45 : vector<16x256xf32>
      %c0_18 = arith.constant 0 : index
      %c0_19 = arith.constant 0 : index
      %c0_20 = arith.constant 0 : index
      %47 = vector.load %arg6[%c0_18, %c0_19, %c0_20] : memref<1x16x256xf32, #tpu.memory_space<vmem>>, vector<1x16x256xf32>
      %48 = vector.shape_cast %47 : vector<1x16x256xf32> to vector<16x256xf32>
      %49 = vector.shape_cast %46 : vector<16x256xf32> to vector<1x16x256xf32>
      tpu.vector_store %arg6[%c0_18, %c0_19, %c0_20], %49 {strides = array<i32>} : memref<1x16x256xf32, #tpu.memory_space<vmem>>, vector<1x16x256xf32>,
    } else {
    }
    return
  }
  func.func @transform_0(%arg0: i32, %arg1: i32, %arg2: i32) -> (i32, i32, i32) {
    %c0_i32 = arith.constant 0 : i32
    %0 = arith.cmpi eq, %arg0, %c0_i32 : i32
    %c0_i32_0 = arith.constant 0 : i32
    %1 = arith.select %0, %arg1, %c0_i32_0 : i32
    %c0_i32_1 = arith.constant 0 : i32
    %2 = arith.cmpi eq, %arg0, %c0_i32_1 : i32
    %c0_i32_2 = arith.constant 0 : i32
    %3 = arith.select %2, %arg2, %c0_i32_2 : i32
    %c0_i32_3 = arith.constant 0 : i32
    %c0_i32_4 = arith.constant 0 : i32
    return %1, %c0_i32_3, %3 : i32, i32, i32
  }
  func.func @transform_1(%arg0: i32, %arg1: i32, %arg2: i32) -> (i32, i32) {
    %c0_i32 = arith.constant 0 : i32
    %c0_i32_0 = arith.constant 0 : i32
    %c0_i32_1 = arith.constant 0 : i32
    return %c0_i32, %c0_i32_0 : i32, i32
  }
  func.func @transform_2(%arg0: i32, %arg1: i32, %arg2: i32) -> (i32, i32) {
    %c0_i32 = arith.constant 0 : i32
    %c0_i32_0 = arith.constant 0 : i32
    %c0_i32_1 = arith.constant 0 : i32
    return %c0_i32, %c0_i32_0 : i32, i32
  }
  func.func @transform_3(%arg0: i32, %arg1: i32, %arg2: i32) -> (i32, i32, i32) {
    %c2_i32 = arith.constant 2 : i32
    %0 = arith.cmpi eq, %arg0, %c2_i32 : i32
    %c0_i32 = arith.constant 0 : i32
    %1 = arith.select %0, %arg1, %c0_i32 : i32
    %c2_i32_0 = arith.constant 2 : i32
    %2 = arith.cmpi eq, %arg0, %c2_i32_0 : i32
    %c0_i32_1 = arith.constant 0 : i32
    %3 = arith.select %2, %arg2, %c0_i32_1 : i32
    %c0_i32_2 = arith.constant 0 : i32
    %c0_i32_3 = arith.constant 0 : i32
    return %1, %c0_i32_2, %3 : i32, i32, i32
  }
}

</mosaic_0001>

<bundles_post_ra>
// kernel: model_forward.1
= control target key start
LH: loop header
LB: loop body
LE: loop exit
PB: predicated region body
PF: predicated region fallthrough
CT: control target
= control target key end

     0   :  { %s1040_s12 = smov 0   ;;  %s1042_s13 = smov 0   ;;  %s1131_s0 = inlined_call_operand.vmem [shape: f32[2,12,256], index: 0, kind: input, shape index: {}]   ;;  %s1132_s1 = inlined_call_operand.vmem [shape: f32[6,15], index: 1, kind: input, shape index: {}]   ;;  %s1133_s2 = inlined_call_operand.vmem [shape: f32[16,9], index: 2, kind: input, shape index: {}]   ;;  %s1134_s3 = inlined_call_operand.vmem [shape: f32[2,16,256], index: 3, kind: output, shape index: {}]  }
   0x1   :  { %s1044_s14 = smov 0   ;;  %s1046_s15 = smov 0  }
   0x2   :  { %s1048_s16 = smov 0  }
   0x3 LB: > { %s28_s17 = sadd.s32 1, %s994_s14  ;;  %s32_s18 = sadd.s32 1, %s998_s15  ;;  %s1002_s16 = sphi %s1048_s16, %s13_s16   ;;  %s998_s15 = sphi %s1046_s15, %s1138_s15   ;;  %s994_s14 = sphi %s1044_s14, %s1137_s14   ;;  %s990_s13 = sphi %s1042_s13, %s1136_s13   ;;  %s986_s12 = sphi %s1040_s12, %s1135_s12  }
   0x4   : > { %p30_p0 = scmp.ge.s32.totalorder %s28_s17, 2  ;;  %p822_p1 = scmp.ge.s32.totalorder %s1002_s16, 1 }
   0x5   : > { %p183_p2 = scmp.lt.s32.totalorder %s1002_s16, 7 }
   0x6   : > { %s1140_s17 = smov (%p30_p0, %s28_s17), 0  ;;  %s1142_s18 = smov (!%p30_p0, %s32_s18), %s998_s15 }
   0x7   : > { %p184_p3 = pnand %p822_p1, %p183_p2  ;;  %p34_p4 = scmp.ge.s32.totalorder %s1142_s18, 3 }
   0x8   : > { %p221_p5 = scmp.eq.s32.totalorder (!%p184_p3), %s990_s13, 0  ;;  %p237_p6 = scmp.eq.s32.totalorder (!%p184_p3), %s990_s13, 2 }
   0x9   : > { %s1144_s18 = smov (%p34_p4, %s1142_s18), 0  ;;  %187 = sbr.rel (%p184_p3) target bundleno = 1840 (0x730), region = 32 }
   0xa   : > { %p255_p7 = scmp.eq.s32.totalorder (!%p184_p3), %s986_s12, 0 }
   0xc   : > { %p259_p9 = pnand (!%p184_p3), %p255_p7, %p221_p5 }
  0x10   : > { %s222_s19 = scalar_select %p221_p5, %s986_s12, 0 }
  0x11   : > { %s238_s20 = scalar_select %p237_p6, %s986_s12, 0 }
  0x12   : > { %p225_p8 = scmp.lt.s32.totalorder %s222_s19, 1  ;;  %262 = sbr.rel (%p259_p9) target bundleno = 25 (0x19), region = 36  ;;  %vm263_vm0 = vcmask (!%p259_p9), 5120   ;;  %vm266_vm1 = vcmask (!%p259_p9), 7168   ;;  %v1004_v0 = vmov (!%p259_p9), 0.0  }
  0x13   : > { %p241_p10 = scmp.lt.s32.totalorder %s238_s20, 1  ;;  %264 = vst.msk [vmem:[#allocation4] sm:$0x3f] (!%p259_p9), %vm263_vm0, %v1004_v0  ;;  %265 = vst.msk [vmem:[#allocation5] sm:$0x3f] (!%p259_p9), %vm263_vm0, %v1004_v0 }
  0x14   : > { %s1146_s19 = smov (!%p225_p8, %s222_s19), 1  ;;  %267 = vst.msk [vmem:[#allocation6] sm:$0xff] (!%p259_p9), %vm266_vm1, %v1004_v0  ;;  %268 = vst.msk [vmem:[#allocation6 + $0x8] sm:$0xff] (!%p259_p9), %vm266_vm1, %v1004_v0 }
  0x15   : > { %s1148_s20 = smov (!%p241_p10, %s238_s20), 1  ;;  %s854_s21 = sshll.u32 %s1146_s19, 5  ;;  %269 = vst.msk [vmem:[#allocation7] sm:$0xff] (!%p259_p9), %vm266_vm1, %v1004_v0  ;;  %270 = vst.msk [vmem:[#allocation7 + $0x8] sm:$0xff] (!%p259_p9), %vm266_vm1, %v1004_v0 }
  0x16   : > { %s232_s24 = scalar_lea.vmem %s1131_s0, %s854_s21  ;;  %s855_s25 = sshll.u32 %s1148_s20, 5 }
  0x17   : > { %s1085_s28 = scalar_lea.vmem %s1134_s3, %s855_s25 }
  0x19 PF: > { %p828_p11 = scmp.ne.s32.totalorder %s990_s13, 0 }
  0x1a   : > { %v275_v1 = vld [vmem:[%s232_s24 + $0x8] sm:$0xff] (!%p828_p11)  ;;  %v277_v2 = vld [vmem:[%s232_s24 + $0x18] sm:$0xf] (!%p828_p11)  ;;  %vm287_vm2 = vcmask (!%p828_p11), 1043456   ;;  %v274_v3 = vld [vmem:[%s232_s24] sm:$0xff] (!%p828_p11)  ;;  %vm1005_vm3 = vmmov (!%p828_p11), 1  }
  0x1b   : > { %273 = sbr.rel (%p828_p11) target bundleno = 398 (0x18e), region = 40  ;;  %v861_v4 = vpack.c.bf16 (!%p828_p11), %v277_v2, %v275_v1  ;;  %vm862_vm4 = vmpackc.low (!%p828_p11), %vm287_vm2, %vm1005_vm3  ;;  %v276_v5 = vld [vmem:[%s232_s24 + $0x10] sm:$0xf] (!%p828_p11)  ;;  %v1006_v7 = vmov (!%p828_p11), 0.0   ;;  %v278_v8 = vld [vmem:[%s1132_s1] sm:$0x3f] (!%p828_p11) }
  0x1c   : > { %v864_v6 = vpack.c.bf16 (!%p828_p11), %v276_v5, %v274_v3  ;;  %358 = vmatprep.mubr.f32.mxu0 (!%p828_p11), %v1006_v7  ;;  %v1007_v9 = vmov (!%p828_p11), 12   ;;  %vm284_vm5 = vcmask (!%p828_p11), 97280   ;;  %s857_s4 = sshll.u32 (!%p828_p11), %s986_s12, 4  ;;  %vm371_vm6 = vcmask (!%p828_p11), 1045504   ;;  %v370_v23 = vld [vmem:[#allocation4] sm:$0x3f] (!%p828_p11) }
  0x1d   : > { %863 = vmatprep.subr.msk.bf16.mxu0 (!%p828_p11), %vm862_vm4, %v861_v4  ;;  %925 = vset.pattern.permute.xlu0 (!%p828_p11), %v1007_v9  ;;  %s367_s5 = scalar_lea.vmem (!%p828_p11), [#allocation2], %s857_s4  ;;  %vm378_vm7 = vcmask (!%p828_p11), 5120   ;;  %v380_v25 = vld [vmem:[#allocation5] sm:$0x3f] (!%p828_p11) }
  0x1e   : > { %866 = vmatpush1.bf16.msk.msra.mxu0 (!%p828_p11), %vm862_vm4, %v864_v6  ;;  %281 = vperm.xlu0 (!%p828_p11), %925, %v278_v8  }
  0x21   : > { %831 = vmatmul.mubr.msk.f32.vlgmr.msra.gmra.mrb[0].mxu0 (!%p828_p11), %vm284_vm5, %v278_v8 }
  0x9d   : > { %v282_v10 = vpop.permute.xlu0 %281 }
  0xf4   : > { %v360_v11 = vpop.f32.mrb[0].mxu0 }
  0xf5   : > { %v361_v12 = vadd.f32 %v360_v11, %v282_v10  ;;  %v362_v13 = vpop.f32.mrb[1].mxu0 }
  0xf6   : > { %v363_v14 = vadd.f32 %v362_v13, %v282_v10 }
  0xf7   : > { %368 = vst [vmem:[%s367_s5] sm:$0x3f] %v361_v12  ;;  %v372_v15 = vsel %vm371_vm6, %v361_v12, 0.0  ;;  %v381_v16 = vmul.f32 %v361_v12, %v361_v12 }
  0xf8   : > { %369 = vst [vmem:[%s367_s5 + $0x8] sm:$0x3f] %v363_v14  ;;  %v373_v17 = vsel %vm371_vm6, %v363_v14, 0.0  ;;  %v382_v18 = vmul.f32 %v363_v14, %v363_v14 }
  0xf9   : > { %v374_v19 = vadd.f32 %v373_v17, %v372_v15  ;;  %v383_v20 = vsel %vm371_vm6, %v381_v16, 0.0 }
  0xfa   : > { %v384_v21 = vsel %vm371_vm6, %v382_v18, 0.0 }
  0xfb   : > { %375 = vadd.xlane.f32.xlu0 %v374_v19  ;;  %v385_v22 = vadd.f32 %v384_v21, %v383_v20 }
  0xfd   : > { %386 = vadd.xlane.f32.xlu1 %v385_v22 }
 0x188   : > { %v376_v24 = vpop.xlane.xlu0 %375 }
 0x189   : > { %v377_v26 = vadd.f32 %v376_v24, %v370_v23 }
 0x18a   : > { %v387_v27 = vpop.xlane.xlu1 %386 }
 0x18b   : > { %379 = vst.msk [vmem:[#allocation4] sm:$0x3f] %vm378_vm7, %v377_v26  ;;  %v388_v28 = vadd.f32 %v387_v27, %v380_v25 }
 0x18d   : > { %389 = vst.msk [vmem:[#allocation5] sm:$0x3f] %vm378_vm7, %v388_v28 }
 0x18e PF: > { %p834_p12 = scmp.ne.s32.totalorder %s990_s13, 1 }
 0x18f   : > { %s1008_s6 = smov (!%p834_p12), 13   ;;  %v1009_v37 = vmov (!%p834_p12), 13   ;;  %v394_v38 = vld [vmem:[%s1132_s1] sm:$0x3f] (!%p834_p12)  ;;  %s1010_s9 = smov (!%p834_p12), 115   ;;  %v1011_v41 = vmov (!%p834_p12), 14  }
 0x190   : > { %393 = sbr.rel (%p834_p12) target bundleno = 1304 (0x518), region = 44  ;;  %926 = vset.pattern.permute.xlu1 (!%p834_p12), %v1009_v37  ;;  %927 = vset.pattern.permute.xlu0 (!%p834_p12), %v1011_v41  ;;  %s1012_s10 = smov (!%p834_p12), 14   ;;  %v1013_v46 = vmov (!%p834_p12), 0.0   ;;  %v450_v47 = vld [vmem:[%s1133_s2] sm:$0xff] (!%p834_p12)  ;;  %v1014_v48 = vmov (!%p834_p12), 6   ;;  %v451_v49 = vld [vmem:[%s1133_s2 + $0x8] sm:$0xff] (!%p834_p12) }
 0x191   : > { %538 = vmatprep.mubr.f32.mxu0 (!%p834_p12), %v1013_v46  ;;  %544 = vmatprep.mubr.f32.mxu1 (!%p834_p12), %v1013_v46  ;;  %s858_s22 = sshll.u32 (!%p834_p12), %s986_s12, 4  ;;  %vm467_vm8 = vcmask (!%p834_p12), 1045504   ;;  %vm462_vm9 = vcmask (!%p834_p12), 48128   ;;  %s859_s24 = sshll.u32 (!%p834_p12), %s986_s12, 5  ;;  %v558_v22 = vld [vmem:[#allocation6] sm:$0xff] (!%p834_p12)  ;;  %v559_v23 = vld [vmem:[#allocation6 + $0x8] sm:$0xff] (!%p834_p12) }
 0x192   : > { %v395_v29 = vld [vmem:[#allocation4] sm:$0x3f] (!%p834_p12)  ;;  %s420_s23 = scalar_lea.vmem (!%p834_p12), [#allocation2], %s858_s22  ;;  %s553_s25 = scalar_lea.vmem (!%p834_p12), [#allocation3], %s859_s24  ;;  %vm568_vm10 = vcmask (!%p834_p12), 7168  }
 0x193   : > { %v396_v31 = vmul.f32 (!%p834_p12), 0.001953125, %v395_v29  ;;  %v421_v50 = vld [vmem:[%s420_s23] sm:$0x3f] (!%p834_p12)  ;;  %v422_v51 = vld [vmem:[%s420_s23 + $0x8] sm:$0x3f] (!%p834_p12) }
 0x194   : > { %v397_v30 = vld [vmem:[#allocation5] sm:$0x3f] (!%p834_p12)  ;;  %v571_v28 = vld [vmem:[#allocation7] sm:$0xff] (!%p834_p12) }
 0x195   : > { %v398_v32 = vmul.f32 (!%p834_p12), 0.001953125, %v397_v30  ;;  %v399_v33 = vmul.f32 (!%p834_p12), %v396_v31, %v396_v31 }
 0x197   : > { %v400_v34 = vsub.f32 %v398_v32, %v399_v33 }
 0x199   : > { %v401_v35 = vadd.f32 0.0001, %v400_v34 }
 0x19b   : > { %930 = vrsqrt.f32 %v401_v35 }
 0x1a5   : > { %v931_v36 = vpop.eup %930 }
 0x1a6   : > { %404 = vrot.lane.b32.xlu0 %v931_v36, %s1008_s6 }
 0x218   : > { %v405_v39 = vpop.permute.xlu0 %404 }
 0x219   : > { %v407_v40 = vmul.f32 %v405_v39, %v394_v38 }
 0x21b   : > { %409 = vrot.lane.b32.xlu0 %v407_v40, %s1010_s9 }
 0x28d   : > { %v410_v42 = vpop.permute.xlu0 %409 }
 0x28e   : > { %v412_v43 = vmul.f32 %v410_v42, %v396_v31  ;;  %v572_v31 = vld [vmem:[#allocation7 + $0x8] sm:$0xff] }
 0x290   : > { %414 = vrot.lane.b32.xlu1 %v412_v43, %s1012_s10 }
 0x294   : > { %424 = vperm.xlu1 %926, %v407_v40  }
 0x298   : > { %928 = vset.pattern.permute.xlu1 %v1014_v48 }
 0x299   : > { %454 = vperm.xlu1 %928, %v450_v47  }
 0x29d   : > { %459 = vperm.xlu1 %928, %v451_v49  }
 0x302   : > { %v415_v44 = vpop.permute.xlu1 %414 }
 0x303   : > { %v417_v45 = vsub.f32 %v394_v38, %v415_v44 }
 0x305   : > { %431 = vperm.xlu0 %927, %v417_v45  }
 0x309   : > { %929 = vset.pattern.permute.xlu0 %v1014_v48 }
 0x313   : > { %v425_v52 = vpop.permute.xlu1 %424 }
 0x314   : > { %v427_v53 = vmul.f32 %v425_v52, %v421_v50  ;;  %v428_v54 = vmul.f32 %v425_v52, %v422_v51 }
 0x318   : > { %v455_v4 = vpop.permute.xlu1 %454 }
 0x31c   : > { %v460_v5 = vpop.permute.xlu1 %459 }
 0x384   : > { %v432_v55 = vpop.permute.xlu0 %431 }
 0x385   : > { %v434_v56 = vadd.f32 %v432_v55, %v427_v53  ;;  %v435_v57 = vadd.f32 %v432_v55, %v428_v54 }
 0x387   : > { %v837_v58 = vmul.f32 -1.442695, %v434_v56  ;;  %v838_v59 = vmul.f32 -1.442695, %v435_v57 }
 0x389   : > { %932 = vpow2.f32 %v837_v58 }
 0x38a   : > { %934 = vpow2.f32 %v838_v59 }
 0x393   : > { %v933_v60 = vpop.eup %932 }
 0x394   : > { %v935_v61 = vpop.eup %934  ;;  %v442_v62 = vadd.f32 1.0, %v933_v60 }
 0x395   : > { %v443_v63 = vadd.f32 1.0, %v935_v61 }
 0x396   : > { %936 = vrcp.f32 %v442_v62 }
 0x397   : > { %938 = vrcp.f32 %v443_v63 }
 0x3a0   : > { %v937_v0 = vpop.eup %936 }
 0x3a1   : > { %v939_v1 = vpop.eup %938  ;;  %v448_v2 = vmul.f32 %v937_v0, %v421_v50 }
 0x3a2   : > { %v449_v3 = vmul.f32 %v939_v1, %v422_v51 }
 0x3a4   : > { %839 = vmatprep.subr.msk.mxu0 %vm467_vm8, %v449_v3  ;;  %867 = vmatprep.subr.msk.mxu1 %vm467_vm8, %v449_v3 }
 0x3a5   : > { %840 = vmatpush1.msk.msra.mxu0 %vm467_vm8, %v448_v2  ;;  %868 = vmatpush1.msk.msra.mxu1 %vm467_vm8, %v448_v2 }
 0x3a6   : > { %841 = vmatmul.mubr.msk.f32.vlgmr.msra.gmra.mrb[0].mxu0 %vm462_vm9, %v450_v47  ;;  %842 = vmatmul.mubr.msk.f32.vlgmr.msra.gmra.mrb[0].mxu1 %vm462_vm9, %v451_v49 }
 0x479   : > { %v540_v6 = vpop.f32.mrb[0].mxu0  ;;  %v546_v7 = vpop.f32.mrb[0].mxu1 }
 0x47a   : > { %v541_v8 = vadd.f32 %v540_v6, %v455_v4  ;;  %v542_v9 = vpop.f32.mrb[1].mxu0  ;;  %v548_v10 = vpop.f32.mrb[1].mxu1  ;;  %v547_v11 = vadd.f32 %v546_v7, %v460_v5 }
 0x47b   : > { %v543_v12 = vadd.f32 %v542_v9, %v455_v4  ;;  %v549_v13 = vadd.f32 %v548_v10, %v460_v5 }
 0x47c   : > { %554 = vst [vmem:[%s553_s25] sm:$0xff] %v541_v8  ;;  %556 = vst [vmem:[%s553_s25 + $0x10] sm:$0xff] %v547_v11  ;;  %v573_v14 = vmul.f32 %v541_v8, %v541_v8  ;;  %v575_v15 = vmul.f32 %v547_v11, %v547_v11 }
 0x47d   : > { %555 = vst [vmem:[%s553_s25 + $0x8] sm:$0xff] %v543_v12  ;;  %557 = vst [vmem:[%s553_s25 + $0x18] sm:$0xff] %v549_v13  ;;  %v560_v16 = vadd.f32 %v543_v12, %v541_v8  ;;  %v563_v17 = vadd.f32 %v549_v13, %v547_v11  ;;  %v574_v18 = vmul.f32 %v543_v12, %v543_v12 }
 0x47e   : > { %v576_v19 = vmul.f32 %v549_v13, %v549_v13 }
 0x47f   : > { %561 = vadd.xlane.f32.xlu0 %v560_v16  ;;  %564 = vadd.xlane.f32.xlu1 %v563_v17  ;;  %v577_v20 = vadd.f32 %v574_v18, %v573_v14 }
 0x480   : > { %v580_v21 = vadd.f32 %v576_v19, %v575_v15 }
 0x483   : > { %578 = vadd.xlane.f32.xlu0 %v577_v20 }
 0x487   : > { %581 = vadd.xlane.f32.xlu0 %v580_v21 }
 0x50c   : > { %v562_v24 = vpop.xlane.xlu0 %561  ;;  %v565_v25 = vpop.xlane.xlu1 %564 }
 0x50d   : > { %v566_v26 = vadd.f32 %v562_v24, %v558_v22  ;;  %v567_v27 = vadd.f32 %v565_v25, %v559_v23 }
 0x50f   : > { %569 = vst.msk [vmem:[#allocation6] sm:$0xff] %vm568_vm10, %v566_v26  ;;  %570 = vst.msk [vmem:[#allocation6 + $0x8] sm:$0xff] %vm568_vm10, %v567_v27 }
 0x510   : > { %v579_v29 = vpop.xlane.xlu0 %578 }
 0x511   : > { %v583_v30 = vadd.f32 %v579_v29, %v571_v28 }
 0x513   : > { %585 = vst.msk [vmem:[#allocation7] sm:$0xff] %vm568_vm10, %v583_v30 }
 0x514   : > { %v582_v32 = vpop.xlane.xlu0 %581 }
 0x515   : > { %v584_v33 = vadd.f32 %v582_v32, %v572_v31 }
 0x517   : > { %586 = vst.msk [vmem:[#allocation7 + $0x8] sm:$0xff] %vm568_vm10, %v584_v33 }
 0x518 PF: > { %p845_p13 = scmp.ne.s32.totalorder %s990_s13, 2 }
 0x519   : > { %v593_v34 = vld [vmem:[#allocation6] sm:$0xff] (!%p845_p13)  ;;  %v594_v36 = vld [vmem:[#allocation6 + $0x8] sm:$0xff] (!%p845_p13)  ;;  %s1015_s26 = smov (!%p845_p13), 7   ;;  %v1016_v50 = vmov (!%p845_p13), 7   ;;  %v591_v51 = vld [vmem:[%s1133_s2] sm:$0xff] (!%p845_p13)  ;;  %s1017_s4 = smov (!%p845_p13), 121  }
 0x51a   : > { %590 = sbr.rel (%p845_p13) target bundleno = 1840 (0x730), region = 48  ;;  %v597_v35 = vld [vmem:[#allocation7] sm:$0xff] (!%p845_p13)  ;;  %v595_v37 = vmul.f32 (!%p845_p13), 0.001953125, %v593_v34  ;;  %v596_v39 = vmul.f32 (!%p845_p13), 0.001953125, %v594_v36  ;;  %940 = vset.pattern.permute.xlu0 (!%p845_p13), %v1016_v50  ;;  %941 = vset.pattern.permute.xlu1 (!%p845_p13), %v1016_v50  ;;  %v592_v54 = vld [vmem:[%s1133_s2 + $0x8] sm:$0xff] (!%p845_p13)  ;;  %s1018_s5 = smov (!%p845_p13), 8  }
 0x51b   : > { %v599_v38 = vmul.f32 (!%p845_p13), 0.001953125, %v597_v35  ;;  %v1019_v61 = vmov (!%p845_p13), 8   ;;  %s860_s6 = sshll.u32 (!%p845_p13), %s986_s12, 5 }
 0x51c   : > { %v601_v42 = vmul.f32 (!%p845_p13), %v595_v37, %v595_v37  ;;  %v602_v43 = vmul.f32 (!%p845_p13), %v596_v39, %v596_v39  ;;  %s641_s7 = scalar_lea.vmem (!%p845_p13), [#allocation3], %s860_s6 }
 0x51d   : > { %v642_v2 = vld [vmem:[%s641_s7] sm:$0xff] (!%p845_p13)  ;;  %v643_v3 = vld [vmem:[%s641_s7 + $0x8] sm:$0xff] (!%p845_p13)  ;;  %v644_v8 = vld [vmem:[%s641_s7 + $0x10] sm:$0xff] (!%p845_p13) }
 0x51e   : > { %v598_v40 = vld [vmem:[#allocation7 + $0x8] sm:$0xff] (!%p845_p13)  ;;  %v603_v44 = vsub.f32 (!%p845_p13), %v599_v38, %v601_v42  ;;  %v645_v9 = vld [vmem:[%s641_s7 + $0x18] sm:$0xff] (!%p845_p13) }
 0x51f   : > { %v600_v41 = vmul.f32 (!%p845_p13), 0.001953125, %v598_v40 }
 0x520   : > { %v605_v46 = vadd.f32 (!%p845_p13), 0.0001, %v603_v44 }
 0x521   : > { %v604_v45 = vsub.f32 %v600_v41, %v602_v43 }
 0x522   : > { %944 = vrsqrt.f32 %v605_v46 }
 0x523   : > { %v606_v47 = vadd.f32 0.0001, %v604_v45 }
 0x525   : > { %946 = vrsqrt.f32 %v606_v47 }
 0x52c   : > { %v945_v48 = vpop.eup %944 }
 0x52d   : > { %611 = vrot.lane.b32.xlu0 %v945_v48, %s1015_s26 }
 0x52f   : > { %v947_v49 = vpop.eup %946 }
 0x531   : > { %613 = vrot.lane.b32.xlu0 %v947_v49, %s1015_s26 }
 0x59f   : > { %v612_v52 = vpop.permute.xlu0 %611 }
 0x5a0   : > { %v617_v53 = vmul.f32 %v612_v52, %v591_v51 }
 0x5a2   : > { %621 = vrot.lane.b32.xlu1 %v617_v53, %s1017_s4 }
 0x5a3   : > { %v614_v55 = vpop.permute.xlu0 %613 }
 0x5a4   : > { %v618_v56 = vmul.f32 %v614_v55, %v592_v54 }
 0x5a6   : > { %623 = vrot.lane.b32.xlu1 %v618_v56, %s1017_s4 }
 0x614   : > { %v622_v57 = vpop.permute.xlu1 %621 }
 0x615   : > { %v627_v58 = vmul.f32 %v622_v57, %v595_v37 }
 0x617   : > { %631 = vrot.lane.b32.xlu0 %v627_v58, %s1018_s5 }
 0x618   : > { %v624_v59 = vpop.permute.xlu1 %623 }
 0x619   : > { %v628_v60 = vmul.f32 %v624_v59, %v596_v39 }
 0x61b   : > { %647 = vperm.xlu0 %940, %v617_v53   ;;  %633 = vrot.lane.b32.xlu1 %v628_v60, %s1018_s5 }
 0x61f   : > { %651 = vperm.xlu1 %941, %v618_v56   ;;  %943 = vset.pattern.permute.xlu0 %v1019_v61 }
 0x623   : > { %942 = vset.pattern.permute.xlu1 %v1019_v61 }
 0x689   : > { %v632_v62 = vpop.permute.xlu0 %631 }
 0x68a   : > { %v637_v63 = vsub.f32 %v591_v51, %v632_v62 }
 0x68c   : > { %660 = vperm.xlu1 %942, %v637_v63  }
 0x68d   : > { %v634_v0 = vpop.permute.xlu1 %633 }
 0x68e   : > { %v638_v1 = vsub.f32 %v592_v54, %v634_v0 }
 0x690   : > { %665 = vperm.xlu0 %943, %v638_v1  }
 0x69a   : > { %v648_v4 = vpop.permute.xlu0 %647 }
 0x69b   : > { %v654_v6 = vmul.f32 %v648_v4, %v642_v2  ;;  %v655_v7 = vmul.f32 %v648_v4, %v643_v3 }
 0x69e   : > { %v652_v5 = vpop.permute.xlu1 %651 }
 0x69f   : > { %v656_v13 = vmul.f32 %v652_v5, %v644_v8  ;;  %v657_v14 = vmul.f32 %v652_v5, %v645_v9 }
 0x70b   : > { %v661_v10 = vpop.permute.xlu1 %660 }
 0x70c   : > { %v668_v11 = vadd.f32 %v661_v10, %v654_v6  ;;  %v669_v12 = vadd.f32 %v661_v10, %v655_v7 }
 0x70e   : > { %v848_v15 = vmul.f32 -1.442695, %v668_v11  ;;  %v849_v16 = vmul.f32 -1.442695, %v669_v12 }
 0x70f   : > { %v666_v17 = vpop.permute.xlu0 %665 }
 0x710   : > { %948 = vpow2.f32 %v848_v15  ;;  %v670_v18 = vadd.f32 %v666_v17, %v656_v13  ;;  %v671_v19 = vadd.f32 %v666_v17, %v657_v14 }
 0x711   : > { %950 = vpow2.f32 %v849_v16 }
 0x712   : > { %v850_v20 = vmul.f32 -1.442695, %v670_v18  ;;  %v851_v21 = vmul.f32 -1.442695, %v671_v19 }
 0x714   : > { %952 = vpow2.f32 %v850_v20 }
 0x715   : > { %954 = vpow2.f32 %v851_v21 }
 0x71a   : > { %v949_v22 = vpop.eup %948 }
 0x71b   : > { %v951_v23 = vpop.eup %950  ;;  %v684_v24 = vadd.f32 1.0, %v949_v22 }
 0x71c   : > { %v685_v25 = vadd.f32 1.0, %v951_v23 }
 0x71d   : > { %956 = vrcp.f32 %v684_v24 }
 0x71e   : > { %v953_v26 = vpop.eup %952  ;;  %958 = vrcp.f32 %v685_v25 }
 0x71f   : > { %v955_v27 = vpop.eup %954  ;;  %v686_v28 = vadd.f32 1.0, %v953_v26 }
 0x720   : > { %v687_v29 = vadd.f32 1.0, %v955_v27 }
 0x721   : > { %960 = vrcp.f32 %v686_v28 }
 0x722   : > { %962 = vrcp.f32 %v687_v29 }
 0x727   : > { %v957_v30 = vpop.eup %956 }
 0x728   : > { %v959_v31 = vpop.eup %958  ;;  %v696_v32 = vmul.f32 %v957_v30, %v642_v2 }
 0x729   : > { %v697_v33 = vmul.f32 %v959_v31, %v643_v3 }
 0x72a   : > { %700 = vst [vmem:[%s1085_s28] sm:$0xff] %v696_v32 }
 0x72b   : > { %v961_v34 = vpop.eup %960  ;;  %701 = vst [vmem:[%s1085_s28 + $0x8] sm:$0xff] %v697_v33 }
 0x72c   : > { %v963_v35 = vpop.eup %962  ;;  %v698_v36 = vmul.f32 %v961_v34, %v644_v8 }
 0x72d   : > { %v699_v37 = vmul.f32 %v963_v35, %v645_v9 }
 0x72e   : > { %702 = vst [vmem:[%s1085_s28 + $0x10] sm:$0xff] %v698_v36 }
 0x72f   : > { %703 = vst [vmem:[%s1085_s28 + $0x18] sm:$0xff] %v699_v37 }
 0x730 PF: > { %s13_s16 = sadd.s32 1, %s1002_s16   ;;  %s1135_s12 = smov %s994_s14 }
 0x731   : > { %p10_p0 = scmp.ge.s32.totalorder %s13_s16, 8   ;;  %s1136_s13 = smov %s998_s15 }
 0x732   : > { %s1137_s14 = smov %s1140_s17  ;;  %s1138_s15 = smov %s1144_s18 }
 0x733   :  { %12 = sbr.rel (!%p10_p0) target bundleno = 3 (0x3), region = 82 }

</bundles_post_ra>
